<compile_context>
chip_gen: v5e
topology: v5e:2x2
jax: 0.10.0
libtpu: 0.0.40
codegen_flags: <defaults>
</compile_context>

<pallas_src>
import functools

import jax
import jax.numpy as jnp
from jax.experimental import pallas as pl
from jax.experimental.pallas import tpu as pltpu

BN_EPS = 1e-5
LANE = 128   # TPU lane width; feature dims are zero-padded to this.


def _round_up(n, m):
    return ((n + m - 1) // m) * m


def _hw_config():
    """Generation-aware budgets (v5e/v6e: 128 MiB VMEM, v7x: 64 MiB/TC)."""
    try:
        vmem_cap = pltpu.get_tpu_info().vmem_capacity_bytes
    except Exception:
        vmem_cap = 64 * 1024 * 1024          # conservative fallback
    if vmem_cap >= 100 * 1024 * 1024:        # v5e / v6e
        return {"max_tile_b": 2048,
                "vmem_limit": 96 * 1024 * 1024,
                "fast_path_budget": 48 * 1024 * 1024}
    return {"max_tile_b": 512,               # v7x
            "vmem_limit": 32 * 1024 * 1024,
            "fast_path_budget": 20 * 1024 * 1024}


def _fold_bn(total, total_sq, gamma, beta, inv_b):
    """Fold batch sums / sums-of-squares into a BatchNorm scale & shift."""
    mean = total * inv_b
    # TODO(synk): Welford / mean-shifted per-tile accumulation if |mean| >> std.
    var = jnp.maximum(total_sq * inv_b - mean * mean, 0.0)  # biased batch var
    scale = gamma * jax.lax.rsqrt(var + BN_EPS)              # rsqrt -> EUP slot
    shift = beta - mean * scale
    return scale, shift


# --------------------------- single-pass kernel -----------------------------

def mlp_single_kernel(x_ref, w0_ref, g0_ref, be0_ref, w1_ref, g1_ref, be1_ref,
                      wo_ref, bo_ref, o_ref, *, inv_b, b_valid, b_pad):
    # Layer-1 pre-activation.  The Linear bias is dropped: a bias added before
    # BatchNorm cancels exactly when the batch mean is subtracted.
    h1 = jnp.dot(x_ref[...], w0_ref[...], preferred_element_type=jnp.float32)

    # Zero-padded batch rows give h1 == 0 exactly, so they add nothing here.
    s1 = jnp.sum(h1, axis=0, keepdims=True)
    q1 = jnp.sum(h1 * h1, axis=0, keepdims=True)
    scale1, shift1 = _fold_bn(s1, q1, g0_ref[...], be0_ref[...], inv_b)
    a1 = jnp.maximum(h1 * scale1 + shift1, 0.0)

    h2 = jnp.dot(a1.astype(jnp.bfloat16), w1_ref[...],
                 preferred_element_type=jnp.float32)
    if b_pad > b_valid:
        # Padded rows are no longer zero after BN1's shift; mask their stats.
        row = jax.lax.broadcasted_iota(jnp.int32, (b_pad, 1), 0)
        m = (row < b_valid).astype(jnp.float32)
        s2 = jnp.sum(h2 * m, axis=0, keepdims=True)
        q2 = jnp.sum((h2 * h2) * m, axis=0, keepdims=True)
    else:
        s2 = jnp.sum(h2, axis=0, keepdims=True)
        q2 = jnp.sum(h2 * h2, axis=0, keepdims=True)
    scale2, shift2 = _fold_bn(s2, q2, g1_ref[...], be1_ref[...], inv_b)
    a2 = jnp.maximum(h2 * scale2 + shift2, 0.0)

    # Final Linear(d1, 1): VPU multiply + lane reduction (no N=1 MXU pass).
    y = jnp.sum(a2 * wo_ref[...], axis=-1, keepdims=True) + bo_ref[0, 0]
    o_ref[...] = y.astype(o_ref.dtype)


# -------------------------- tiled 3-sweep kernel -----------------------------

def mlp_tiled_kernel(x_ref, w0_ref, g0_ref, be0_ref, w1_ref, g1_ref, be1_ref,
                     wo_ref, bo_ref, o_ref,
                     s1_ref, q1_ref, s2_ref, q2_ref,
                     sc1_ref, sh1_ref, sc2_ref, sh2_ref,
                     *, inv_b, b_valid):
    sweep = pl.program_id(0)   # 0: layer-1 stats, 1: layer-2 stats, 2: output
    tile = pl.program_id(1)    # batch tile
    tb = x_ref.shape[0]

    @pl.when(jnp.logical_and(sweep == 0, tile == 0))
    def _init_stats():
        s1_ref[...] = jnp.zeros_like(s1_ref)
        q1_ref[...] = jnp.zeros_like(q1_ref)
        s2_ref[...] = jnp.zeros_like(s2_ref)
        q2_ref[...] = jnp.zeros_like(q2_ref)

    # BN folds hoisted out of the per-tile body: once per sweep at tile 0.
    @pl.when(jnp.logical_and(sweep == 1, tile == 0))
    def _fold_bn1():
        sc, sh = _fold_bn(s1_ref[...], q1_ref[...], g0_ref[...], be0_ref[...],
                          inv_b)
        sc1_ref[...] = sc
        sh1_ref[...] = sh

    @pl.when(jnp.logical_and(sweep == 2, tile == 0))
    def _fold_bn2():
        sc, sh = _fold_bn(s2_ref[...], q2_ref[...], g1_ref[...], be1_ref[...],
                          inv_b)
        sc2_ref[...] = sc
        sh2_ref[...] = sh

    # Layer-1 pre-activation (pre-BN bias dropped: cancels inside BatchNorm).
    h1 = jnp.dot(x_ref[...], w0_ref[...], preferred_element_type=jnp.float32)

    @pl.when(sweep == 0)
    def _accum_layer1_stats():
        # Zero-padded batch rows give h1 == 0 exactly -> contribute nothing.
        s1_ref[...] += jnp.sum(h1, axis=0, keepdims=True)
        q1_ref[...] += jnp.sum(h1 * h1, axis=0, keepdims=True)

    def _layer2_preact():
        a1 = jnp.maximum(h1 * sc1_ref[...] + sh1_ref[...], 0.0)
        return jnp.dot(a1.astype(jnp.bfloat16), w1_ref[...],
                       preferred_element_type=jnp.float32)

    @pl.when(sweep == 1)
    def _accum_layer2_stats():
        h2 = _layer2_preact()
        # Padded rows are nonzero after BN1's shift; mask them out of stats.
        row = jax.lax.broadcasted_iota(jnp.int32, (tb, 1), 0) + tile * tb
        m = (row < b_valid).astype(jnp.float32)
        s2_ref[...] += jnp.sum(h2 * m, axis=0, keepdims=True)
        q2_ref[...] += jnp.sum((h2 * h2) * m, axis=0, keepdims=True)

    @pl.when(sweep == 2)
    def _finalize():
        # TODO(synk): cache h2 (bf16) to an HBM scratch during sweep 1 (aliased
        # in/out or manual DMA) to avoid re-running both matmuls here.
        h2 = _layer2_preact()
        a2 = jnp.maximum(h2 * sc2_ref[...] + sh2_ref[...], 0.0)
        y = jnp.sum(a2 * wo_ref[...], axis=-1, keepdims=True) + bo_ref[0, 0]
        o_ref[...] = y.astype(o_ref.dtype)


# --------------------------------- wrapper -----------------------------------

def mlp_forward(x, params, *, force_tiled=False, force_tile_b=None):
    B, d_in = x.shape
    d0 = params["w0"].shape[1]
    d1 = params["w1"].shape[1]
    d_in_p = _round_up(d_in, LANE)
    d0_p = _round_up(d0, LANE)
    d1_p = _round_up(d1, LANE)
    cfg = _hw_config()

    # Parameters: pad feature dims to 128 lanes.  Padded gamma/beta/wo lanes
    # are 0, so padded lanes stay exactly 0 through BN/ReLU and never reach y.
    w0p = jnp.pad(params["w0"], ((0, d_in_p - d_in), (0, d0_p - d0))
                  ).astype(jnp.bfloat16)
    w1p = jnp.pad(params["w1"], ((0, d0_p - d0), (0, d1_p - d1))
                  ).astype(jnp.bfloat16)
    g0p = jnp.pad(params["g0"], ((0, 0), (0, d0_p - d0)))
    be0p = jnp.pad(params["be0"], ((0, 0), (0, d0_p - d0)))
    g1p = jnp.pad(params["g1"], ((0, 0), (0, d1_p - d1)))
    be1p = jnp.pad(params["be1"], ((0, 0), (0, d1_p - d1)))
    wop = jnp.pad(params["wo"].T, ((0, 0), (0, d1_p - d1)))   # (1, d1_p) f32
    bo = params["bo"]                                          # (1, 1)  f32

    vmem_spec = pl.BlockSpec(memory_space=pltpu.MemorySpace.VMEM)
    smem_spec = pl.BlockSpec(memory_space=pltpu.MemorySpace.SMEM)
    param_bytes = (g0p.size + be0p.size + g1p.size + be1p.size
                   + wop.size + bo.size) * 4
    weight_bytes = (w0p.size + w1p.size) * 2

    # Per-row VMEM footprint (x bf16, h1 f32, a1 bf16, h2 f32, a2 f32, y f32).
    per_row = 2 * d_in_p + 4 * d0_p + 2 * d0_p + 4 * d1_p + 4 * d1_p + 4

    # ---------------- single-pass fast path (whole batch fits VMEM) ---------
    b8 = _round_up(B, 8)
    single_bytes = b8 * per_row + weight_bytes + param_bytes
    if not force_tiled and single_bytes <= cfg["fast_path_budget"]:
        xp = jnp.pad(x, ((0, b8 - B), (0, d_in_p - d_in))).astype(jnp.bfloat16)
        cost = pl.CostEstimate(
            flops=int(2 * b8 * (d_in_p * d0_p + d0_p * d1_p + d1_p)),
            transcendentals=int(d0_p + d1_p),
            bytes_accessed=int(xp.size * 2 + weight_bytes + param_bytes
                               + b8 * 4))
        kernel = functools.partial(mlp_single_kernel, inv_b=1.0 / B,
                                   b_valid=B, b_pad=b8)
        out = pl.pallas_call(
            kernel,
            out_shape=jax.ShapeDtypeStruct((b8, 1), jnp.float32),
            in_specs=[vmem_spec] * 8 + [smem_spec],
            out_specs=vmem_spec,
            compiler_params=pltpu.CompilerParams(
                vmem_limit_bytes=cfg["vmem_limit"]),
            cost_estimate=cost,
        )(xp, w0p, g0p, be0p, w1p, g1p, be1p, wop, bo)
        return out[:B]

    # ---------------- tiled 3-sweep path (exact full-batch BatchNorm) -------
    if force_tile_b is not None:
        tb = int(force_tile_b)
    else:
        tb = min(cfg["max_tile_b"], b8)
        budget = int(cfg["vmem_limit"] * 0.6)
        # Double-buffered weights + params + BN scratch + slack.
        fixed = 2 * weight_bytes + 2 * param_bytes + 16 * (d0_p + d1_p) + 65536
        # Double-buffered x tile + intermediates + double-buffered out tile.
        per_row_t = per_row + 2 * d_in_p + 4
        while tb > 8 and fixed + tb * per_row_t > budget:
            tb = max(8, tb // 2)
    assert tb % 8 == 0
    b_pad = _round_up(B, tb)
    nt = b_pad // tb

    xp = jnp.pad(x, ((0, b_pad - B), (0, d_in_p - d_in))).astype(jnp.bfloat16)

    def _const(shape):
        # Constant index_map -> parameter stays VMEM-resident across the grid.
        # TODO(synk): pipeline_mode=pl.Buffered(1) to single-buffer these on v7x.
        return pl.BlockSpec(shape, lambda s, i: (0, 0))

    in_specs = [
        pl.BlockSpec((tb, d_in_p), lambda s, i: (i, 0)),        # x tile
        _const((d_in_p, d0_p)), _const((1, d0_p)), _const((1, d0_p)),
        _const((d0_p, d1_p)), _const((1, d1_p)), _const((1, d1_p)),
        _const((1, d1_p)),
        smem_spec,                                               # bo scalar
    ]
    # Output block index only advances during the final sweep -> every (tb,1)
    # block is written back to HBM exactly once, and only with real data.
    out_spec = pl.BlockSpec((tb, 1), lambda s, i: (jnp.where(s == 2, i, 0), 0))

    cost = pl.CostEstimate(
        flops=int(2 * b_pad * (3 * d_in_p * d0_p + 2 * d0_p * d1_p + d1_p)),
        transcendentals=int(d0_p + d1_p),
        bytes_accessed=int(3 * xp.size * 2 + weight_bytes + param_bytes
                           + b_pad * 4))

    kernel = functools.partial(mlp_tiled_kernel, inv_b=1.0 / B, b_valid=B)
    out = pl.pallas_call(
        kernel,
        out_shape=jax.ShapeDtypeStruct((b_pad, 1), jnp.float32),
        grid_spec=pltpu.PrefetchScalarGridSpec(
            num_scalar_prefetch=0,
            grid=(3, nt),
            in_specs=in_specs,
            out_specs=out_spec,
            scratch_shapes=[pltpu.VMEM((1, d0_p), jnp.float32),   # sum    h1
                            pltpu.VMEM((1, d0_p), jnp.float32),   # sumsq  h1
                            pltpu.VMEM((1, d1_p), jnp.float32),   # sum    h2
                            pltpu.VMEM((1, d1_p), jnp.float32),   # sumsq  h2
                            pltpu.VMEM((1, d0_p), jnp.float32),   # scale1
                            pltpu.VMEM((1, d0_p), jnp.float32),   # shift1
                            pltpu.VMEM((1, d1_p), jnp.float32),   # scale2
                            pltpu.VMEM((1, d1_p), jnp.float32)]), # shift2
        compiler_params=pltpu.CompilerParams(
            # Full-batch BN stats live in shared scratch -> sequential grid.
            # TODO(synk): per-core partial stats to mark the tile axis
            # 'parallel' and use both v7x TensorCores.
            dimension_semantics=("arbitrary", "arbitrary"),
            vmem_limit_bytes=cfg["vmem_limit"]),
        cost_estimate=cost,
    )(xp, w0p, g0p, be0p, w1p, g1p, be1p, wop, bo)
    return out[:B]


# ----------------------------- reference & init ------------------------------

def xavier_uniform(key, fan_in, fan_out):
    bound = (6.0 / (fan_in + fan_out)) ** 0.5
    return jax.random.uniform(key, (fan_in, fan_out), jnp.float32,
                              minval=-bound, maxval=bound)


def init_params(key, input_dim, mlp_dims):
    d0, d1 = mlp_dims
    k0, k1, k2 = jax.random.split(key, 3)
    return {
        "w0": xavier_uniform(k0, input_dim, d0),
        "b0": jnp.zeros((1, d0), jnp.float32),
        "g0": jnp.ones((1, d0), jnp.float32),
        "be0": jnp.zeros((1, d0), jnp.float32),
        "w1": xavier_uniform(k1, d0, d1),
        "b1": jnp.zeros((1, d1), jnp.float32),
        "g1": jnp.ones((1, d1), jnp.float32),
        "be1": jnp.zeros((1, d1), jnp.float32),
        "wo": xavier_uniform(k2, d1, 1),
        "bo": jnp.zeros((1, 1), jnp.float32),
    }


def _bn_relu_ref(h, gamma, beta):
    mean = jnp.mean(h, axis=0, keepdims=True)
    var = jnp.mean((h - mean) ** 2, axis=0, keepdims=True)
    h = (h - mean) * jax.lax.rsqrt(var + BN_EPS) * gamma + beta
    return jnp.maximum(h, 0.0)


def mlp_reference(x, params, *, bf16_matmul):
    cast = (lambda a: a.astype(jnp.bfloat16)) if bf16_matmul else (lambda a: a)
    h = jnp.dot(cast(x), cast(params["w0"]),
                preferred_element_type=jnp.float32) + params["b0"]
    h = _bn_relu_ref(h, params["g0"], params["be0"])
    h = jnp.dot(cast(h), cast(params["w1"]),
                preferred_element_type=jnp.float32) + params["b1"]
    h = _bn_relu_ref(h, params["g1"], params["be1"])
    return jnp.dot(h, params["wo"]) + params["bo"]


if __name__ == "__main__":
    key = jax.random.PRNGKey(0)
    kx, kp, kx2 = jax.random.split(key, 3)

    B, INPUT_DIM = 8, 32
    MLP_DIMS = (64, 32)

    x = jax.random.normal(kx, (B, INPUT_DIM), jnp.float32)
    params = init_params(kp, INPUT_DIM, MLP_DIMS)

    # Fast path (single-pass, whole batch in VMEM).
    out = jax.block_until_ready(mlp_forward(x, params))
    assert out.shape == (B, 1)
    ref_bf16 = mlp_reference(x, params, bf16_matmul=True)
    assert jnp.allclose(out, ref_bf16, atol=5e-3, rtol=5e-3), (
        float(jnp.max(jnp.abs(out - ref_bf16))))
    ref_f32 = mlp_reference(x, params, bf16_matmul=False)
    assert jnp.allclose(out, ref_f32, atol=0.25, rtol=0.1), (
        float(jnp.max(jnp.abs(out - ref_f32))))

    # Tiled 3-sweep path, exercised with a ragged batch (pads + masked stats).
    B2 = 300
    x2 = jax.random.normal(kx2, (B2, INPUT_DIM), jnp.float32)
    out2 = jax.block_until_ready(
        mlp_forward(x2, params, force_tiled=True, force_tile_b=128))
    assert out2.shape == (B2, 1)
    ref2 = mlp_reference(x2, params, bf16_matmul=True)
    assert jnp.allclose(out2, ref2, atol=2e-2, rtol=2e-2), (
        float(jnp.max(jnp.abs(out2 - ref2))))

    print("KERNEL_OK")
</pallas_src>

<mosaic_0001>
module attributes {stable_mosaic.version = 11 : i64} {
  func.func @mlp_single_kernel(%arg0: memref<8x128xbf16, #tpu.memory_space<vmem>>, %arg1: memref<128x128xbf16, #tpu.memory_space<vmem>>, %arg2: memref<1x128xf32, #tpu.memory_space<vmem>>, %arg3: memref<1x128xf32, #tpu.memory_space<vmem>>, %arg4: memref<128x128xbf16, #tpu.memory_space<vmem>>, %arg5: memref<1x128xf32, #tpu.memory_space<vmem>>, %arg6: memref<1x128xf32, #tpu.memory_space<vmem>>, %arg7: memref<1x128xf32, #tpu.memory_space<vmem>>, %arg8: memref<1x1xf32, #tpu.memory_space<smem>>, %arg9: memref<8x1xf32, #tpu.memory_space<vmem>>) attributes {dimension_semantics = [], scalar_prefetch = 0 : i64, scratch_operands = 0 : i64, tpu.core_type = #tpu.core_type<tc>} {
    %c0 = arith.constant 0 : index
    %c0_0 = arith.constant 0 : index
    %0 = vector.load %arg0[%c0, %c0_0] : memref<8x128xbf16, #tpu.memory_space<vmem>>, vector<8x128xbf16>
    %c0_1 = arith.constant 0 : index
    %c0_2 = arith.constant 0 : index
    %1 = vector.load %arg1[%c0_1, %c0_2] : memref<128x128xbf16, #tpu.memory_space<vmem>>, vector<128x128xbf16>
    %cst = arith.constant dense<0.000000e+00> : vector<8x128xf32>
    %2 = tpu.matmul %0, %1, %cst {dimension_numbers = #tpu.dot_dimension_numbers<[1], [0], [0], [1], [0, 0, 1, 1], [], []>} : vector<8x128xbf16>, vector<128x128xbf16>, vector<8x128xf32> -> vector<8x128xf32>
    %cst_3 = arith.constant dense<0.000000e+00> : vector<128xf32>
    %3 = vector.multi_reduction <add>, %2, %cst_3 [0] : vector<8x128xf32> to vector<128xf32>
    %4 = vector.shape_cast %3 : vector<128xf32> to vector<1x128xf32>
    %5 = arith.mulf %2, %2 : vector<8x128xf32>
    %cst_4 = arith.constant dense<0.000000e+00> : vector<128xf32>
    %6 = vector.multi_reduction <add>, %5, %cst_4 [0] : vector<8x128xf32> to vector<128xf32>
    %7 = vector.shape_cast %6 : vector<128xf32> to vector<1x128xf32>
    %c0_5 = arith.constant 0 : index
    %c0_6 = arith.constant 0 : index
    %8 = vector.load %arg2[%c0_5, %c0_6] : memref<1x128xf32, #tpu.memory_space<vmem>>, vector<1x128xf32>
    %c0_7 = arith.constant 0 : index
    %c0_8 = arith.constant 0 : index
    %9 = vector.load %arg3[%c0_7, %c0_8] : memref<1x128xf32, #tpu.memory_space<vmem>>, vector<1x128xf32>
    %cst_9 = arith.constant 1.250000e-01 : f32
    %10 = vector.broadcast %cst_9 : f32 to vector<1x128xf32>
    %11 = arith.mulf %4, %10 : vector<1x128xf32>
    %cst_10 = arith.constant 1.250000e-01 : f32
    %12 = vector.broadcast %cst_10 : f32 to vector<1x128xf32>
    %13 = arith.mulf %7, %12 : vector<1x128xf32>
    %14 = arith.mulf %11, %11 : vector<1x128xf32>
    %15 = arith.subf %13, %14 : vector<1x128xf32>
    %cst_11 = arith.constant 0.000000e+00 : f32
    %16 = vector.broadcast %cst_11 : f32 to vector<1x128xf32>
    %17 = arith.maximumf %15, %16 : vector<1x128xf32>
    %cst_12 = arith.constant 9.99999974E-6 : f32
    %18 = vector.broadcast %cst_12 : f32 to vector<1x128xf32>
    %19 = arith.addf %17, %18 : vector<1x128xf32>
    %20 = math.rsqrt %19 : vector<1x128xf32>
    %21 = arith.mulf %8, %20 : vector<1x128xf32>
    %22 = arith.mulf %11, %21 : vector<1x128xf32>
    %23 = arith.subf %9, %22 : vector<1x128xf32>
    %24 = vector.broadcast %21 : vector<1x128xf32> to vector<8x128xf32>
    %25 = arith.mulf %2, %24 : vector<8x128xf32>
    %26 = vector.broadcast %23 : vector<1x128xf32> to vector<8x128xf32>
    %27 = arith.addf %25, %26 : vector<8x128xf32>
    %cst_13 = arith.constant 0.000000e+00 : f32
    %28 = vector.broadcast %cst_13 : f32 to vector<8x128xf32>
    %29 = arith.maximumf %27, %28 : vector<8x128xf32>
    %30 = arith.truncf %29 : vector<8x128xf32> to vector<8x128xbf16>
    %c0_14 = arith.constant 0 : index
    %c0_15 = arith.constant 0 : index
    %31 = vector.load %arg4[%c0_14, %c0_15] : memref<128x128xbf16, #tpu.memory_space<vmem>>, vector<128x128xbf16>
    %cst_16 = arith.constant dense<0.000000e+00> : vector<8x128xf32>
    %32 = tpu.matmul %30, %31, %cst_16 {dimension_numbers = #tpu.dot_dimension_numbers<[1], [0], [0], [1], [0, 0, 1, 1], [], []>} : vector<8x128xbf16>, vector<128x128xbf16>, vector<8x128xf32> -> vector<8x128xf32>
    %cst_17 = arith.constant dense<0.000000e+00> : vector<128xf32>
    %33 = vector.multi_reduction <add>, %32, %cst_17 [0] : vector<8x128xf32> to vector<128xf32>
    %34 = vector.shape_cast %33 : vector<128xf32> to vector<1x128xf32>
    %35 = arith.mulf %32, %32 : vector<8x128xf32>
    %cst_18 = arith.constant dense<0.000000e+00> : vector<128xf32>
    %36 = vector.multi_reduction <add>, %35, %cst_18 [0] : vector<8x128xf32> to vector<128xf32>
    %37 = vector.shape_cast %36 : vector<128xf32> to vector<1x128xf32>
    %c0_19 = arith.constant 0 : index
    %c0_20 = arith.constant 0 : index
    %38 = vector.load %arg5[%c0_19, %c0_20] : memref<1x128xf32, #tpu.memory_space<vmem>>, vector<1x128xf32>
    %c0_21 = arith.constant 0 : index
    %c0_22 = arith.constant 0 : index
    %39 = vector.load %arg6[%c0_21, %c0_22] : memref<1x128xf32, #tpu.memory_space<vmem>>, vector<1x128xf32>
    %cst_23 = arith.constant 1.250000e-01 : f32
    %40 = vector.broadcast %cst_23 : f32 to vector<1x128xf32>
    %41 = arith.mulf %34, %40 : vector<1x128xf32>
    %cst_24 = arith.constant 1.250000e-01 : f32
    %42 = vector.broadcast %cst_24 : f32 to vector<1x128xf32>
    %43 = arith.mulf %37, %42 : vector<1x128xf32>
    %44 = arith.mulf %41, %41 : vector<1x128xf32>
    %45 = arith.subf %43, %44 : vector<1x128xf32>
    %cst_25 = arith.constant 0.000000e+00 : f32
    %46 = vector.broadcast %cst_25 : f32 to vector<1x128xf32>
    %47 = arith.maximumf %45, %46 : vector<1x128xf32>
    %cst_26 = arith.constant 9.99999974E-6 : f32
    %48 = vector.broadcast %cst_26 : f32 to vector<1x128xf32>
    %49 = arith.addf %47, %48 : vector<1x128xf32>
    %50 = math.rsqrt %49 : vector<1x128xf32>
    %51 = arith.mulf %38, %50 : vector<1x128xf32>
    %52 = arith.mulf %41, %51 : vector<1x128xf32>
    %53 = arith.subf %39, %52 : vector<1x128xf32>
    %54 = vector.broadcast %51 : vector<1x128xf32> to vector<8x128xf32>
    %55 = arith.mulf %32, %54 : vector<8x128xf32>
    %56 = vector.broadcast %53 : vector<1x128xf32> to vector<8x128xf32>
    %57 = arith.addf %55, %56 : vector<8x128xf32>
    %cst_27 = arith.constant 0.000000e+00 : f32
    %58 = vector.broadcast %cst_27 : f32 to vector<8x128xf32>
    %59 = arith.maximumf %57, %58 : vector<8x128xf32>
    %c0_28 = arith.constant 0 : index
    %c0_29 = arith.constant 0 : index
    %60 = vector.load %arg7[%c0_28, %c0_29] : memref<1x128xf32, #tpu.memory_space<vmem>>, vector<1x128xf32>
    %61 = vector.broadcast %60 : vector<1x128xf32> to vector<8x128xf32>
    %62 = arith.mulf %59, %61 : vector<8x128xf32>
    %cst_30 = arith.constant dense<0.000000e+00> : vector<8xf32>
    %63 = vector.multi_reduction <add>, %62, %cst_30 [1] : vector<8x128xf32> to vector<8xf32>
    %64 = vector.shape_cast %63 : vector<8xf32> to vector<8x1xf32>
    %c0_31 = arith.constant 0 : index
    %c0_32 = arith.constant 0 : index
    %65 = memref.load %arg8[%c0_31, %c0_32] : memref<1x1xf32, #tpu.memory_space<smem>>
    %66 = vector.broadcast %65 : f32 to vector<8x1xf32>
    %67 = arith.addf %64, %66 : vector<8x1xf32>
    %c0_33 = arith.constant 0 : index
    %c0_34 = arith.constant 0 : index
    %68 = vector.load %arg9[%c0_33, %c0_34] : memref<8x1xf32, #tpu.memory_space<vmem>>, vector<8x1xf32>
    tpu.vector_store %arg9[%c0_33, %c0_34], %67 {strides = array<i32>} : memref<8x1xf32, #tpu.memory_space<vmem>>, vector<8x1xf32>,
    return
  }
}

</mosaic_0001>

<bundles_post_ra>
// kernel: tpu_custom_call.1
= control target key start
LH: loop header
LB: loop body
LE: loop exit
PB: predicated region body
PF: predicated region fallthrough
CT: control target
= control target key end

     0   :  { %15 = vsyncpa [#allocation4], 0  ;;  %s589_s0 = inlined_call_operand.hbm [shape: bf16[8,128], index: 0, kind: input, shape index: {}]   ;;  %s590_s1 = inlined_call_operand.hbm [shape: bf16[128,128], index: 1, kind: input, shape index: {}]   ;;  %s591_s2 = inlined_call_operand.vmem [shape: f32[1,128], index: 2, kind: input, shape index: {}]   ;;  %s592_s3 = inlined_call_operand.vmem [shape: f32[1,128], index: 3, kind: input, shape index: {}]   ;;  %s593_s4 = inlined_call_operand.hbm [shape: bf16[128,128], index: 4, kind: input, shape index: {}]   ;;  %s594_s5 = inlined_call_operand.vmem [shape: f32[1,128], index: 5, kind: input, shape index: {}]   ;;  %s595_s6 = inlined_call_operand.vmem [shape: f32[1,128], index: 6, kind: input, shape index: {}]   ;;  %s596_s7 = inlined_call_operand.vmem [shape: f32[1,128], index: 7, kind: input, shape index: {}]   ;;  %s597_s8 = inlined_call_operand.<no memory space> [shape: f32[1,1], index: 8, kind: input, shape index: {}]   ;;  %s598_s9 = inlined_call_operand.vmem [shape: f32[8,1], index: 9, kind: output, shape index: {}]  }
   0x1   :  { %16 = vsyncpa [#allocation6], 0  ;;  %s32_s11 = sshll.u32 %s590_s1, 4  ;;  %s504_s12 = smov [#allocation5]   ;;  %s33_s11 = int_to_ptr.hbm [resolvable:$true] %s32_s11 }
   0x2   :  { %s34_s13 = sshll.u32 %s504_s12, 4  ;;  %s22_s16 = sshll.u32 %s589_s0, 4  ;;  %s35_s13 = int_to_ptr.vmem [resolvable:$true] %s34_s13  ;;  %s23_s16 = int_to_ptr.hbm [resolvable:$true] %s22_s16 }
   0x3   :  { %s505_s17 = smov 64   ;;  %s506_s18 = smov 4  }
   0x4   :  { %40 = dma.hbm_to_vmem [thread:$0]  %s33_s11, 1024, %s35_s13, [#allocation6], %s505_s17, %s505_s17, %s506_s18  }
   0x5   :  { %s507_s19 = smov [#allocation3]   ;;  %s49_s23 = sshll.u32 %s593_s4, 4  ;;  %s50_s23 = int_to_ptr.hbm [resolvable:$true] %s49_s23 }
   0x6   :  { %s24_s20 = sshll.u32 %s507_s19, 4  ;;  %s508_s1 = smov [#allocation7]   ;;  %s25_s20 = int_to_ptr.vmem [resolvable:$true] %s24_s20 }
   0x7   :  { %27 = dma.hbm_to_vmem [thread:$0]  %s23_s16, 64, %s25_s20, [#allocation4]  }
   0x8   :  { %s51_s24 = sshll.u32 %s508_s1, 4  ;;  %s52_s24 = int_to_ptr.vmem [resolvable:$true] %s51_s24 }
   0x9   :  { %57 = dma.hbm_to_vmem [thread:$0]  %s50_s23, 1024, %s52_s24, [#allocation6], %s505_s17, %s505_s17, %s506_s18  }
   0xa   :  { %500 = dma.done.wait [#allocation4], 64  }
   0xb   :  { %501 = vsyncadd [#allocation4], 4294967232 }
   0xc   :  { %502 = dma.done.wait [#allocation6], 2048  }
   0xd   :  { %503 = vsyncadd [#allocation6], 4294965248  ;;  %v409_v0 = vld [vmem:[#allocation5 + $0x38] sm:$0xff]  ;;  %v408_v1 = vld [vmem:[#allocation5 + $0x30] sm:$0xff]  ;;  %vm330_vm6 = vcmask 7168  }
   0xe   :  { %143 = vmatpush.bf16.msra.mxu0 %v409_v0  ;;  %v407_v2 = vld [vmem:[#allocation5 + $0x28] sm:$0xff]  ;;  %v406_v3 = vld [vmem:[#allocation5 + $0x20] sm:$0xff]  ;;  %v405_v4 = vld [vmem:[#allocation5 + $0x18] sm:$0xff] }
   0xf   :  { %v404_v5 = vld [vmem:[#allocation5 + $0x10] sm:$0xff]  ;;  %v403_v6 = vld [vmem:[#allocation5 + $0x8] sm:$0xff]  ;;  %v402_v7 = vld [vmem:[#allocation5] sm:$0xff] }
  0x10   :  { %v78_v8 = vld [vmem:[#allocation3] sm:$0xf]  ;;  %v416_v10 = vld [vmem:[#allocation7 + $0x30] sm:$0xff]  ;;  %v415_v11 = vld [vmem:[#allocation7 + $0x28] sm:$0xff] }
  0x11   :  { %v417_v9 = vld [vmem:[#allocation7 + $0x38] sm:$0xff]  ;;  %v414_v12 = vld [vmem:[#allocation7 + $0x20] sm:$0xff]  ;;  %v412_v17 = vld [vmem:[#allocation7 + $0x10] sm:$0xff] }
  0x12   :  { %144 = vmatpush.bf16.msra.mxu0 %v408_v1  ;;  %264 = vmatpush.bf16.msra.mxu1 %v417_v9  ;;  %v413_v13 = vld [vmem:[#allocation7 + $0x18] sm:$0xff]  ;;  %v411_v22 = vld [vmem:[#allocation7 + $0x8] sm:$0xff]  ;;  %v410_v28 = vld [vmem:[#allocation7] sm:$0xff] }
  0x13   :  { %v169_v43 = vld [vmem:[%s591_s2] sm:$0x1] }
  0x14   :  { %v170_v47 = vld [vmem:[%s592_s3] sm:$0x1] }
  0x16   :  { %145 = vmatpush.bf16.msra.mxu0 %v407_v2  ;;  %265 = vmatpush.bf16.msra.mxu1 %v416_v10 }
  0x1a   :  { %146 = vmatpush.bf16.msra.mxu0 %v406_v3  ;;  %266 = vmatpush.bf16.msra.mxu1 %v415_v11 }
  0x1e   :  { %147 = vmatpush.bf16.msra.mxu0 %v405_v4  ;;  %267 = vmatpush.bf16.msra.mxu1 %v414_v12 }
  0x22   :  { %148 = vmatpush.bf16.msra.mxu0 %v404_v5  ;;  %268 = vmatpush.bf16.msra.mxu1 %v413_v13 }
  0x26   :  { %149 = vmatpush.bf16.msra.mxu0 %v403_v6  ;;  %269 = vmatpush.bf16.msra.mxu1 %v412_v17 }
  0x2a   :  { %150 = vmatpush.bf16.msra.mxu0 %v402_v7  ;;  %270 = vmatpush.bf16.msra.mxu1 %v411_v22  ;;  %v291_v22 = vld [vmem:[%s595_s6] sm:$0x1] }
  0x2d   :  { %151 = vmatmul.bf16.vlgmr.msra.gmra.mxu0 %v78_v8 }
  0x2e   :  { %271 = vmatpush.bf16.msra.mxu1 %v410_v28 }
  0xaa   :  { %v152_v14 = vpop.f32.mrf.mxu0 }
  0xab   :  { %v156_v15 = vrot.slane %v152_v14, 4  ;;  %v162_v16 = vmul.f32 %v152_v14, %v152_v14 }
  0xad   :  { %v157_v18 = vadd.f32 %v156_v15, %v152_v14  ;;  %v163_v19 = vrot.slane %v162_v16, 4 }
  0xaf   :  { %v158_v20 = vrot.slane %v157_v18, 2  ;;  %v164_v21 = vadd.f32 %v163_v19, %v162_v16 }
  0xb1   :  { %v159_v23 = vadd.f32 %v158_v20, %v157_v18  ;;  %v165_v24 = vrot.slane %v164_v21, 2  ;;  %v290_v18 = vld [vmem:[%s594_s5] sm:$0x1] }
  0xb2   :  { %v154_v25 = vpop.f32.mrf.mxu0 }
  0xb3   :  { %v160_v26 = vrot.slane %v159_v23, 1  ;;  %v166_v27 = vadd.f32 %v165_v24, %v164_v21 }
  0xb5   :  { %v167_v29 = vrot.slane %v166_v27, 1  ;;  %v161_v30 = vadd.f32 %v160_v26, %v159_v23 }
  0xb7   :  { %v168_v31 = vadd.f32 %v167_v29, %v166_v27  ;;  %v171_v32 = vmul.f32 0.125, %v161_v30  ;;  %v423_v29 = vld [vmem:[%s596_s7] ss:$0 sm:$0xff] }
  0xb9   :  { %v172_v33 = vmul.f32 0.125, %v168_v31  ;;  %v173_v34 = vmul.f32 %v171_v32, %v171_v32 }
  0xbb   :  { %v174_v35 = vsub.f32 %v172_v33, %v173_v34 }
  0xbd   :  { %v175_v36 = vmax.f32 %v174_v35, 0.0 }
  0xbf   :  { %v176_v37 = vadd.f32 1e-05, %v175_v36 }
  0xc1   :  { %424 = vrsqrt.f32 %v176_v37  ;;  %vm183_vm1 = vweird.f32 %v176_v37 }
  0xc7   :  { %v425_v38 = vpop.eup %424 }
  0xc8   :  { %v178_v39 = vmul.f32 %v425_v38, %v176_v37  ;;  %vm184_vm0 = vweird.f32 %v425_v38 }
  0xc9   :  { %vm185_vm2 = vmor %vm183_vm1, %vm184_vm0 }
  0xca   :  { %v179_v40 = vmul.f32 %v425_v38, %v178_v39 }
  0xcc   :  { %v180_v41 = vmul.f32 0.5, %v179_v40 }
  0xce   :  { %v181_v42 = vsub.f32 1.5, %v180_v41 }
  0xd0   :  { %v182_v44 = vmul.f32 %v425_v38, %v181_v42 }
  0xd2   :  { %v186_v45 = vsel %vm185_vm2, %v425_v38, %v182_v44 }
  0xd3   :  { %v187_v46 = vmul.f32 %v186_v45, %v169_v43 }
  0xd5   :  { %v188_v48 = vmul.f32 %v187_v46, %v171_v32  ;;  %v191_v49 = vperm.slane %v187_v46, 0  ;;  %v328_v32 = vstv %s597_s8 }
  0xd7   :  { %v189_v50 = vsub.f32 %v170_v47, %v188_v48  ;;  %v193_v51 = vmul.f32 %v191_v49, %v152_v14 }
  0xd9   :  { %v195_v52 = vperm.slane %v189_v50, 0 }
  0xdb   :  { %v197_v53 = vadd.f32 %v195_v52, %v193_v51 }
  0xdd   :  { %v198_v54 = vmax.f32 %v197_v53, 0.0 }
  0xdf   :  { %v199_v55 = vpack.c.bf16 %v198_v54, %v198_v54 }
  0xe1   :  { %272 = vmatmul.bf16.vlgmr.msra.gmra.mxu1 %v199_v55 }
 0x15e   :  { %v273_v56 = vpop.f32.mrf.mxu1 }
 0x15f   :  { %v277_v57 = vrot.slane %v273_v56, 4  ;;  %v283_v58 = vmul.f32 %v273_v56, %v273_v56 }
 0x161   :  { %v278_v59 = vadd.f32 %v277_v57, %v273_v56  ;;  %v284_v60 = vrot.slane %v283_v58, 4 }
 0x163   :  { %v279_v61 = vrot.slane %v278_v59, 2  ;;  %v285_v62 = vadd.f32 %v284_v60, %v283_v58 }
 0x165   :  { %v280_v63 = vadd.f32 %v279_v61, %v278_v59  ;;  %v286_v0 = vrot.slane %v285_v62, 2 }
 0x166   :  { %v275_v1 = vpop.f32.mrf.mxu1 }
 0x167   :  { %v281_v2 = vrot.slane %v280_v63, 1  ;;  %v287_v3 = vadd.f32 %v286_v0, %v285_v62 }
 0x169   :  { %v288_v4 = vrot.slane %v287_v3, 1  ;;  %v282_v5 = vadd.f32 %v281_v2, %v280_v63 }
 0x16b   :  { %v289_v6 = vadd.f32 %v288_v4, %v287_v3  ;;  %v292_v7 = vmul.f32 0.125, %v282_v5 }
 0x16d   :  { %v293_v8 = vmul.f32 0.125, %v289_v6  ;;  %v294_v9 = vmul.f32 %v292_v7, %v292_v7 }
 0x16f   :  { %v295_v10 = vsub.f32 %v293_v8, %v294_v9 }
 0x171   :  { %v296_v11 = vmax.f32 %v295_v10, 0.0 }
 0x173   :  { %v297_v12 = vadd.f32 1e-05, %v296_v11 }
 0x175   :  { %426 = vrsqrt.f32 %v297_v12  ;;  %vm304_vm4 = vweird.f32 %v297_v12 }
 0x17b   :  { %v427_v13 = vpop.eup %426 }
 0x17c   :  { %v299_v14 = vmul.f32 %v427_v13, %v297_v12  ;;  %vm305_vm3 = vweird.f32 %v427_v13 }
 0x17d   :  { %vm306_vm5 = vmor %vm304_vm4, %vm305_vm3 }
 0x17e   :  { %v300_v15 = vmul.f32 %v427_v13, %v299_v14 }
 0x180   :  { %v301_v16 = vmul.f32 0.5, %v300_v15 }
 0x182   :  { %v302_v17 = vsub.f32 1.5, %v301_v16 }
 0x184   :  { %v303_v19 = vmul.f32 %v427_v13, %v302_v17 }
 0x186   :  { %v307_v20 = vsel %vm306_vm5, %v427_v13, %v303_v19 }
 0x187   :  { %v308_v21 = vmul.f32 %v307_v20, %v290_v18 }
 0x189   :  { %v309_v23 = vmul.f32 %v308_v21, %v292_v7  ;;  %v312_v24 = vperm.slane %v308_v21, 0 }
 0x18b   :  { %v310_v25 = vsub.f32 %v291_v22, %v309_v23  ;;  %v314_v26 = vmul.f32 %v312_v24, %v273_v56 }
 0x18d   :  { %v316_v27 = vperm.slane %v310_v25, 0 }
 0x18f   :  { %v318_v28 = vadd.f32 %v316_v27, %v314_v26 }
 0x191   :  { %v319_v30 = vmax.f32 %v318_v28, 0.0 }
 0x193   :  { %v324_v31 = vmul.f32 %v423_v29, %v319_v30 }
 0x195   :  { %325 = vadd.xlane.f32.xlu0 %v324_v31 }
 0x208   :  { %v326_v33 = vpop.xlane.xlu0 %325 }
 0x209   :  { %v329_v34 = vadd.f32 %v328_v32, %v326_v33 }
 0x20b   :  { %331 = vst.msk [vmem:[%s598_s9] sm:$0xff] %vm330_vm6, %v329_v34 }
 0x20c   :  { %336 = vsyncpa [#allocation4], 1 }
 0x20d   :  { %337 = vsyncpa [#allocation6], 1 }

</bundles_post_ra>
